<compile_context>
chip_gen: v7x
topology: tpu7x:2x2x1
jax: 0.10.0
libtpu: 0.0.40
codegen_flags: <defaults>
</compile_context>

<pallas_src>
import functools

import jax
import jax.numpy as jnp
from jax.experimental import pallas as pl
from jax.experimental.pallas import tpu as pltpu


def _round_up(x: int, mult: int) -> int:
    return ((x + mult - 1) // mult) * mult


def _rff_kernel(v_ref, b_ref, o_ref, *, g: int, e: int):
    # v_ref: (TMp, g*K) native dtype; b_ref: (g*K, g*E) f32 (pre-scaled by 2*pi,
    # block-diagonal when g > 1); o_ref: (TMp, g*2E).
    v = v_ref[...].astype(jnp.float32)                      # in-kernel upcast
    vp = jnp.dot(v, b_ref[...], preferred_element_type=jnp.float32)  # (TMp, g*E)
    c = jnp.cos(vp)                                         # f32 range reduction
    s = jnp.sin(vp)
    pieces = []
    for j in range(g):                                      # static lane slices
        pieces.append(c[:, j * e:(j + 1) * e])
        pieces.append(s[:, j * e:(j + 1) * e])
    out = jnp.concatenate(pieces, axis=-1)                  # lane-dense when g*2E == 128
    o_ref[...] = out.astype(o_ref.dtype)                    # only the store is cast


def gaussian_encoding_pallas(
    v: jax.Array,
    b: jax.Array,
    *,
    out_dtype=None,
    tm_max: int = 8192,                 # logical rows per grid step (upper bound)
    vmem_budget: int = 10 * 1024 * 1024,  # double-buffered block budget (safe on v5e default)
) -> jax.Array:
    """v: (N, *, K), b: (E, K). Returns (N, *, 2E)."""
    *lead, input_size = v.shape
    encoded_size, in_b = b.shape
    assert in_b == input_size, "b.shape[1] must equal v.shape[-1]"
    out_dtype = v.dtype if out_dtype is None else out_dtype

    m = 1
    for d in lead:
        m *= int(d)
    out_width = 2 * encoded_size

    # Lane-dense packing factor (pure HBM reshapes on both sides).
    if 0 < out_width < 128 and 128 % out_width == 0 and m % (128 // out_width) == 0:
        g = 128 // out_width
    else:
        g = 1

    mp = m // g                 # packed rows
    kp = g * input_size         # packed input lane width
    wp = g * out_width          # packed output lane width (=128 when g > 1)

    v_pk = v.reshape(mp, kp)    # native dtype; no wrapper upcast, free reshape
    # One-time tiny parameter transform: fold 2*pi, transpose, replicate block-diag.
    b_t = (2.0 * jnp.pi) * b.astype(jnp.float32).T                       # (K, E)
    b_big = jnp.kron(jnp.eye(g, dtype=jnp.float32), b_t) if g > 1 else b_t  # (g*K, g*E)

    in_isz = jnp.dtype(v.dtype).itemsize
    out_isz = jnp.dtype(out_dtype).itemsize

    # VMEM cost of one packed row, using the real lane-padded widths.
    bytes_per_packed_row = (_round_up(kp, 128) * in_isz
                            + _round_up(wp, 128) * out_isz)

    align = 8  # sublane granularity for packed-row tiles
    tmp_vmem = max(align, (vmem_budget // (2 * bytes_per_packed_row)) // align * align)
    tmp_user = max(align, (max(tm_max, g * align) // g) // align * align)
    tmp_cap = min(tmp_vmem, tmp_user)
    if mp <= align:
        tmp = mp                                   # single full block (tiny input)
    else:
        # Aim for >=4 grid steps (megacore sharding + DMA/compute pipelining).
        tmp = min(tmp_cap, max(align, _round_up(pl.cdiv(mp, 4), align)))
    grid = (pl.cdiv(mp, tmp),)

    cost = pl.CostEstimate(
        flops=2 * m * input_size * encoded_size,
        transcendentals=2 * m * encoded_size,
        bytes_accessed=(m * input_size * in_isz
                        + int(b_big.size) * 4
                        + m * out_width * out_isz),
    )

    kernel = functools.partial(_rff_kernel, g=g, e=encoded_size)
    out_pk = pl.pallas_call(
        kernel,
        out_shape=jax.ShapeDtypeStruct((mp, wp), out_dtype),
        grid_spec=pltpu.PrefetchScalarGridSpec(
            num_scalar_prefetch=0,
            grid=grid,
            in_specs=[
                pl.BlockSpec((tmp, kp), lambda i: (i, 0)),
                pl.BlockSpec((kp, g * encoded_size), lambda i: (0, 0)),
            ],
            out_specs=pl.BlockSpec((tmp, wp), lambda i: (i, 0)),
        ),
        compiler_params=pltpu.CompilerParams(
            dimension_semantics=("parallel",),
        ),
        cost_estimate=cost,
    )(v_pk, b_big)

    return out_pk.reshape(*lead, out_width)


def gaussian_encoding_ref(v: jax.Array, b: jax.Array) -> jax.Array:
    vp = 2.0 * jnp.pi * jnp.einsum("...i,ei->...e", v.astype(jnp.float32),
                                   b.astype(jnp.float32))
    return jnp.concatenate([jnp.cos(vp), jnp.sin(vp)], axis=-1)


if __name__ == "__main__":
    key = jax.random.PRNGKey(0)

    # --- Config 1: module-style config (sigma=10, K=4, E=32) -> packed path (2E=64<128).
    sigma = 10.0
    input_size = 4
    encoded_size = 32
    kb, kv, kb2, kv2 = jax.random.split(key, 4)
    b = jax.random.normal(kb, (encoded_size, input_size), dtype=jnp.float32) * sigma
    v = jax.random.normal(kv, (2, 8, input_size), dtype=jnp.float32)   # (batch=2, seq=8, K=4)

    out = jax.block_until_ready(gaussian_encoding_pallas(v, b))
    ref = gaussian_encoding_ref(v, b)
    assert out.shape == (2, 8, 2 * encoded_size), out.shape
    # Folding 2*pi into b changes argument rounding by a few ulp of O(100) args.
    assert jnp.allclose(out, ref, atol=5e-4, rtol=0), float(jnp.max(jnp.abs(out - ref)))

    # bf16 output (halves HBM writeback); compute stays in f32.
    out_bf16 = jax.block_until_ready(
        gaussian_encoding_pallas(v, b, out_dtype=jnp.bfloat16))
    assert out_bf16.dtype == jnp.bfloat16
    assert float(jnp.max(jnp.abs(out_bf16.astype(jnp.float32) - ref))) < 2e-2

    # --- Config 2: 2E=128 (already lane-dense, g=1), odd K, multiple grid steps.
    input_size2, encoded_size2 = 3, 64
    b2 = jax.random.normal(kb2, (encoded_size2, input_size2), dtype=jnp.float32)
    v2 = jax.random.normal(kv2, (2, 16, input_size2), dtype=jnp.float32)
    out2 = jax.block_until_ready(gaussian_encoding_pallas(v2, b2))
    ref2 = gaussian_encoding_ref(v2, b2)
    assert out2.shape == (2, 16, 2 * encoded_size2), out2.shape
    assert jnp.allclose(out2, ref2, atol=5e-4, rtol=0), float(jnp.max(jnp.abs(out2 - ref2)))

    print("KERNEL_OK")
</pallas_src>

<mosaic_0001>
module attributes {stable_mosaic.version = 11 : i64} {
  func.func @_rff_kernel(%arg0: i32, %arg1: memref<8x8xf32, #tpu.memory_space<vmem>>, %arg2: memref<8x64xf32, #tpu.memory_space<vmem>>, %arg3: memref<8x128xf32, #tpu.memory_space<vmem>>) attributes {dimension_semantics = [#tpu.dimension_semantics<parallel>], iteration_bounds = array<i64: 1>, scalar_prefetch = 0 : i64, scratch_operands = 0 : i64, tpu.core_type = #tpu.core_type<tc>, window_params = [{transform_indices = @transform_0, window_bounds = array<i64: 8, 8>}, {pipeline_mode = #tpu.pipeline_mode<synchronous>, transform_indices = @transform_1, window_bounds = array<i64: 8, 64>}, {transform_indices = @transform_2, window_bounds = array<i64: 8, 128>}]} {
    %c0 = arith.constant 0 : index
    %c0_0 = arith.constant 0 : index
    %0 = vector.load %arg1[%c0, %c0_0] : memref<8x8xf32, #tpu.memory_space<vmem>>, vector<8x8xf32>
    %c0_1 = arith.constant 0 : index
    %c0_2 = arith.constant 0 : index
    %1 = vector.load %arg2[%c0_1, %c0_2] : memref<8x64xf32, #tpu.memory_space<vmem>>, vector<8x64xf32>
    %cst = arith.constant dense<0.000000e+00> : vector<8x64xf32>
    %2 = tpu.matmul %0, %1, %cst {dimension_numbers = #tpu.dot_dimension_numbers<[1], [0], [0], [1], [0, 0, 1, 1], [], []>} : vector<8x8xf32>, vector<8x64xf32>, vector<8x64xf32> -> vector<8x64xf32>
    %3 = math.cos %2 : vector<8x64xf32>
    %4 = math.sin %2 : vector<8x64xf32>
    %5 = vector.extract_strided_slice %3 {offsets = [0, 0], sizes = [8, 32], strides = [1, 1]} : vector<8x64xf32> to vector<8x32xf32>
    %6 = vector.extract_strided_slice %4 {offsets = [0, 0], sizes = [8, 32], strides = [1, 1]} : vector<8x64xf32> to vector<8x32xf32>
    %7 = vector.extract_strided_slice %3 {offsets = [0, 32], sizes = [8, 32], strides = [1, 1]} : vector<8x64xf32> to vector<8x32xf32>
    %8 = vector.extract_strided_slice %4 {offsets = [0, 32], sizes = [8, 32], strides = [1, 1]} : vector<8x64xf32> to vector<8x32xf32>
    %9 = tpu.concatenate %5, %6, %7, %8 in 1 : vector<8x32xf32>, vector<8x32xf32>, vector<8x32xf32>, vector<8x32xf32> -> vector<8x128xf32>
    %c0_3 = arith.constant 0 : index
    %c0_4 = arith.constant 0 : index
    %10 = vector.load %arg3[%c0_3, %c0_4] : memref<8x128xf32, #tpu.memory_space<vmem>>, vector<8x128xf32>
    tpu.vector_store %arg3[%c0_3, %c0_4], %9 {strides = array<i32>} : memref<8x128xf32, #tpu.memory_space<vmem>>, vector<8x128xf32>,
    return
  }
  func.func @transform_0(%arg0: i32) -> (i32, i32) {
    %c0_i32 = arith.constant 0 : i32
    %c0_i32_0 = arith.constant 0 : i32
    return %arg0, %c0_i32 : i32, i32
  }
  func.func @transform_1(%arg0: i32) -> (i32, i32) {
    %c0_i32 = arith.constant 0 : i32
    %c0_i32_0 = arith.constant 0 : i32
    %c0_i32_1 = arith.constant 0 : i32
    return %c0_i32, %c0_i32_0 : i32, i32
  }
  func.func @transform_2(%arg0: i32) -> (i32, i32) {
    %c0_i32 = arith.constant 0 : i32
    %c0_i32_0 = arith.constant 0 : i32
    return %arg0, %c0_i32 : i32, i32
  }
}

</mosaic_0001>

<bundles_post_ra>
// kernel: tpu_custom_call.1
= control target key start
LH: loop header
LB: loop body
LE: loop exit
PB: predicated region body
PF: predicated region fallthrough
CT: control target
= control target key end

     0   :  { %7 = vsyncpa [#allocation3], 0  ;;  %s547_s0 = inlined_call_operand.hbm [shape: f32[8,8], index: 0, kind: input, shape index: {}]   ;;  %s548_s1 = inlined_call_operand.hbm [shape: f32[8,64], index: 1, kind: input, shape index: {}]   ;;  %s549_s2 = inlined_call_operand.hbm [shape: f32[8,128], index: 2, kind: output, shape index: {}]  }
   0x1   :  { %8 = vsyncpa [#allocation6], 0 }
   0x2   :  { %9 = vsyncpa [#allocation4], 0  ;;  %s462_s9 = smov [#allocation2]   ;;  %s463_s11 = smov [#allocation5]  }
   0x3   :  { %s16_s10 = sshll.u32 %s462_s9, 4  ;;  %s26_s12 = sshll.u32 %s463_s11, 4  ;;  %s17_s10 = int_to_ptr.vmem [resolvable:$true] %s16_s10  ;;  %s27_s12 = int_to_ptr.vmem [resolvable:$true] %s26_s12 }
   0x4   :  { %s390_s15 = scalar_lea.hbm %s547_s0, 128 }
   0x5   :  { %p391_p0 = scmp.ne.s32.totalorder %s547_s0, %s390_s15  ;;  %p394_p1 = scmp.lt.u32.totalorder %s390_s15, %s547_s0 }
   0x7   :  { %p396_p2 = pnand %p394_p1, %p391_p0 }
   0x9   :  { %399 = shalt.err (!%p396_p2)
}
   0xa   :  { %s400_s20 = scalar_lea.vmem %s17_s10, 128  ;;  %p405_p4 = scmp.lt.s32.totalorder %s17_s10, %s17_s10 }
   0xb   :  { %p401_p3 = scmp.ne.s32.totalorder %s17_s10, %s400_s20  ;;  %p406_p5 = scmp.lt.s32.totalorder %s400_s20, %s400_s20 }
   0xd   :  { %p407_p6 = por %p406_p5, %p405_p4 }
   0xf   :  { %p408_p7 = pnand %p407_p6, %p401_p3 }
  0x11   :  { %411 = shalt.err (!%p408_p7)
}
  0x12   :  { %19 = dma.hbm_to_vmem [thread:$0]  %s547_s0, 128, %s17_s10, [#allocation3]  }
  0x13   :  { %s412_s25 = scalar_lea.hbm %s548_s1, 128 }
  0x14   :  { %p413_p8 = scmp.ne.s32.totalorder %s548_s1, %s412_s25  ;;  %p416_p9 = scmp.lt.u32.totalorder %s412_s25, %s548_s1 }
  0x16   :  { %p418_p10 = pnand %p416_p9, %p413_p8 }
  0x18   :  { %421 = shalt.err (!%p418_p10)
}
  0x19   :  { %s422_s30 = scalar_lea.vmem %s27_s12, 128  ;;  %p427_p12 = scmp.lt.s32.totalorder %s27_s12, %s27_s12 }
  0x1a   :  { %p423_p11 = scmp.ne.s32.totalorder %s27_s12, %s422_s30  ;;  %p428_p13 = scmp.lt.s32.totalorder %s422_s30, %s422_s30 }
  0x1c   :  { %p429_p0 = por %p428_p13, %p427_p12 }
  0x1e   :  { %p430_p1 = pnand %p429_p0, %p423_p11 }
  0x20   :  { %433 = shalt.err (!%p430_p1)
}
  0x21   :  { %29 = dma.hbm_to_vmem [thread:$0]  %s548_s1, 128, %s27_s12, [#allocation6]  }
  0x22   :  { %456 = dma.done.wait [#allocation3], 128  }
  0x23   :  { %457 = vsyncadd [#allocation3], 4294967168 }
  0x24   :  { %458 = dma.done.wait [#allocation6], 128  }
  0x25   :  { %459 = vsyncadd [#allocation6], 4294967168  ;;  %v464_v0 = vmov 0.0   ;;  %vm465_vm0 = vmmov 0   ;;  %vm38_vm1 = vcmask 64512   ;;  %v37_v1 = vld [vmem:[#allocation5] sm:$0xff] }
  0x26   :  { %364 = vmatprep.subr.mxu0 %v464_v0  ;;  %366 = vmatprep.mubr.msk.f32.mxu0 %vm465_vm0, %v464_v0  ;;  %v36_v2 = vld [vmem:[#allocation2] sm:$0xff]  ;;  %v466_v15 = vmov 683565275   ;;  %v467_v17 = vmov 2475754826   ;;  %s472_s1 = smov 64  }
  0x27   :  { %365 = vmatpush3.msra.mxu0 %v37_v1  ;;  %v468_v20 = vmov 2131351028   ;;  %v469_v23 = vmov 2102212464   ;;  %v470_v26 = vmov 920167782  }
  0x28   :  { %367 = vmatmul.mubr.msk.f32.vlgmr.msra.gmra.mrb[0].mxu0 %vm38_vm1, %v36_v2  ;;  %v471_v29 = vmov 1326507024   ;;  %s473_s4 = smov 32   ;;  %s474_s5 = smov [#allocation7]  }
  0x29   :  { %s343_s6 = sshll.u32 %s474_s5, 4  ;;  %s344_s6 = int_to_ptr.vmem [resolvable:$true] %s343_s6 }
  0x2a   :  { %s434_s7 = scalar_lea.vmem %s344_s6, 128  ;;  %p439_p3 = scmp.lt.s32.totalorder %s344_s6, %s344_s6 }
  0x2b   :  { %p435_p2 = scmp.ne.s32.totalorder %s344_s6, %s434_s7  ;;  %p440_p4 = scmp.lt.s32.totalorder %s434_s7, %s434_s7 }
  0x2d   :  { %p441_p5 = por %p440_p4, %p439_p3 }
  0x2f   :  { %p442_p6 = pnand %p441_p5, %p435_p2 }
  0xfb   :  { %v514_v3 = vpop.f32.mrb[0].mxu0 }
  0xfc   :  { %v115_v4 = vand.u32 2139095040, %v514_v3  ;;  %v368_v5 = vpop.f32.mrb[1].mxu0  ;;  %v112_v9 = vand.u32 2147483647, %v514_v3  ;;  %vm114_vm9 = vcmp.lt.s32.totalorder %v514_v3, 0  ;;  %vm204_vm0 = vweird.f32 %v514_v3 }
  0xfe   :  { %v116_v6 = vshrl.u32 %v115_v4, 23  ;;  %v119_v12 = vand.u32 8388607, %v112_v9  ;;  %vm113_vm10 = vcmp.le.f32.partialorder %v112_v9, 0.7853982 }
 0x100   :  { %v354_v7 = vadd.s32 4294967169, %v116_v6  ;;  %v120_v31 = vor.u32 8388608, %v119_v12 }
 0x102   :  { %v122_v8 = vadd.s32 1, %v354_v7  ;;  %v160_v45 = vshll.u32 %v120_v31, 8 }
 0x104   :  { %vm123_vm2 = vcmp.gt.s32.totalorder %v122_v8, 0 }
 0x105   :  { %v124_v10 = vsel %vm123_vm2, %v122_v8, 0  ;;  %vm330_vm2 = vcmask 261120  }
 0x106   :  { %v126_v11 = vand.u32 31, %v124_v10  ;;  %v125_v14 = vshrl.u32 %v124_v10, 5 }
 0x108   :  { %v127_v13 = vsub.s32 32, %v126_v11  ;;  %v129_v16 = vshll.u32 %v466_v15, %v126_v11  ;;  %v132_v18 = vshll.u32 %v467_v17, %v126_v11  ;;  %v135_v22 = vshll.u32 %v468_v20, %v126_v11 }
 0x109   :  { %v138_v25 = vshll.u32 %v469_v23, %v126_v11  ;;  %v141_v28 = vshll.u32 %v470_v26, %v126_v11  ;;  %vm144_vm3 = vcmp.lt.s32.totalorder %v125_v14, 1  ;;  %vm147_vm4 = vcmp.lt.s32.totalorder %v125_v14, 4 }
 0x10a   :  { %v130_v19 = vshrl.u32 %v467_v17, %v127_v13  ;;  %v133_v21 = vshrl.u32 %v468_v20, %v127_v13  ;;  %v136_v24 = vshrl.u32 %v469_v23, %v127_v13  ;;  %v139_v27 = vshrl.u32 %v470_v26, %v127_v13 }
 0x10b   :  { %v142_v30 = vshrl.u32 %v471_v29, %v127_v13  ;;  %v128_v40 = vshrl.u32 %v466_v15, %v127_v13  ;;  %vm146_vm5 = vcmp.lt.s32.totalorder %v125_v14, 3  ;;  %vm145_vm6 = vcmp.lt.s32.totalorder %v125_v14, 2 }
 0x10c   :  { %v131_v32 = vor.u32 %v130_v19, %v129_v16  ;;  %v134_v33 = vor.u32 %v133_v21, %v132_v18  ;;  %v137_v34 = vor.u32 %v136_v24, %v135_v22  ;;  %v140_v35 = vor.u32 %v139_v27, %v138_v25 }
 0x10d   :  { %v143_v36 = vor.u32 %v142_v30, %v141_v28 }
 0x10e   :  { %v149_v37 = vsel %vm147_vm4, %v137_v34, 2102212464  ;;  %v152_v38 = vsel %vm144_vm3, %v131_v32, %v134_v33  ;;  %v156_v39 = vsel %vm144_vm3, %v134_v33, %v137_v34  ;;  %v153_v41 = vsel %vm147_vm4, %v140_v35, 920167782 }
 0x10f   :  { %v157_v42 = vsel %vm147_vm4, %v143_v36, 1326507024  ;;  %v154_v43 = vsel %vm146_vm5, %v137_v34, %v153_v41  ;;  %v148_v46 = vsel %vm144_vm3, %v128_v40, %v131_v32  ;;  %v150_v47 = vsel %vm146_vm5, %v134_v33, %v149_v37 }
 0x110   :  { %v158_v44 = vsel %vm146_vm5, %v140_v35, %v157_v42  ;;  %v155_v48 = vsel %vm145_vm6, %v152_v38, %v154_v43  ;;  %v151_v54 = vsel %vm145_vm6, %v148_v46, %v150_v47  ;;  %vm332_vm3 = vcmask 523264  }
 0x111   :  { %v159_v49 = vsel %vm145_vm6, %v156_v39, %v158_v44  ;;  %v523_v52 = vmul.u32.u64.low %v160_v45, %v155_v48  ;;  %v524_v53 = vmul.u32.u64.high %v160_v45, %v155_v48, %v523_v52  ;;  %v167_v56 = vmul.u32 %v160_v45, %v151_v54 }
 0x112   :  { %v520_v50 = vmul.u32.u64.low %v160_v45, %v159_v49  ;;  %v521_v51 = vmul.u32.u64.high %v160_v45, %v159_v49, %v520_v50  ;;  %vm334_vm4 = vcmask 785408  }
 0x113   :  { %v170_v55 = vadd.s32 1, %v524_v53 }
 0x114   :  { %vm169_vm7 = vc.u32 %v521_v51, %v523_v52  ;;  %v168_v5 = vadd.s32 %v523_v52, %v521_v51 }
 0x115   :  { %v171_v57 = vsel %vm169_vm7, %v170_v55, %v524_v53 }
 0x116   :  { %v172_v58 = vadd.s32 %v171_v57, %v167_v56 }
 0x118   :  { %v173_v59 = vadd.s32 536870912, %v172_v58 }
 0x11a   :  { %v174_v60 = vshrl.u32 %v173_v59, 30 }
 0x11c   :  { %v175_v61 = vshll.u32 %v174_v60, 30  ;;  %v198_v18 = vsub.s32 4, %v174_v60 }
 0x11e   :  { %v176_v62 = vsub.s32 %v172_v58, %v175_v61  ;;  %v199_v21 = vsel %vm114_vm9, %v198_v18, %v174_v60 }
 0x11f   :  { %v201_v23 = vsel %vm113_vm10, 0, %v199_v21 }
 0x120   :  { %v178_v63 = vsub.s32 0, %v176_v62  ;;  %v308_v24 = vadd.s32 3, %v201_v23  ;;  %v205_v26 = vand.u32 3, %v201_v23 }
 0x122   :  { %v355_v0 = vmin.u32 %v178_v63, %v176_v62  ;;  %v309_v25 = vand.u32 3, %v308_v24  ;;  %vm207_vm13 = vcmp.eq.s32.totalorder %v205_v26, 0  ;;  %vm210_vm14 = vcmp.eq.s32.totalorder %v205_v26, 2 }
 0x123   :  { %vm206_vm1 = vcmp.lt.s32.totalorder %v205_v26, 2 }
 0x124   :  { %v180_v1 = vclz %v355_v0  ;;  %vm314_vm11 = vcmp.eq.s32.totalorder %v309_v25, 2  ;;  %vm311_vm12 = vcmp.eq.s32.totalorder %v309_v25, 0  ;;  %vm310_vm15 = vcmp.lt.s32.totalorder %v309_v25, 2 }
 0x126   :  { %v356_v2 = vadd.s32 4294967294, %v180_v1 }
 0x128   :  { %vm357_vm8 = vcmp.lt.s32.totalorder %v356_v2, 0 }
 0x129   :  { %v183_v4 = vsel %vm357_vm8, 0, %v356_v2 }
 0x12a   :  { %v184_v6 = vsub.s32 32, %v183_v4  ;;  %v188_v7 = vsub.s32 4294967266, %v183_v4  ;;  %v185_v8 = vshll.u32 %v176_v62, %v183_v4 }
 0x12c   :  { %v186_v10 = vshrl.u32 %v168_v5, %v184_v6  ;;  %v189_v11 = vadd.s32 127, %v188_v7 }
 0x12e   :  { %v187_v12 = vor.u32 %v186_v10, %v185_v8  ;;  %v190_v13 = vshll.u32 %v189_v11, 23 }
 0x130   :  { %v191_v14 = vor.u32 4788187, %v190_v13  ;;  %v194_v16 = vcvt.s32.f32 %v187_v12 }
 0x132   :  { %v192_v15 = vand.u32 2147483647, %v191_v14 }
 0x134   :  { %v195_v17 = vmul.f32 %v194_v16, %v192_v15 }
 0x136   :  { %v196_v19 = vxor.u32 2147483648, %v195_v17 }
 0x138   :  { %v197_v20 = vsel %vm114_vm9, %v196_v19, %v195_v17 }
 0x139   :  { %v200_v22 = vsel %vm113_vm10, %v514_v3, %v197_v20 }
 0x13a   :  { %386 = vcosq.f32 %v200_v22 }
 0x13b   :  { %388 = vsinq.f32 %v200_v22 }
 0x144   :  { %v387_v27 = vpop.eup %386 }
 0x145   :  { %v389_v28 = vpop.eup %388  ;;  %v211_v29 = vxor.u32 2147483648, %v387_v27 }
 0x146   :  { %v208_v30 = vxor.u32 2147483648, %v389_v28 }
 0x147   :  { %v316_v31 = vsel %vm314_vm11, %v211_v29, %v389_v28  ;;  %v212_v33 = vsel %vm210_vm14, %v211_v29, %v389_v28 }
 0x148   :  { %v313_v9 = vsel %vm311_vm12, %v387_v27, %v208_v30  ;;  %v209_v32 = vsel %vm207_vm13, %v387_v27, %v208_v30 }
 0x149   :  { %v317_v34 = vsel %vm310_vm15, %v313_v9, %v316_v31  ;;  %v213_v36 = vsel %vm206_vm1, %v209_v32, %v212_v33 }
 0x14a   :  { %v318_v35 = vsel %vm204_vm0, nan, %v317_v34  ;;  %v214_v37 = vsel %vm204_vm0, nan, %v213_v36 }
 0x14b   :  { %327 = vrot.lane.b32.xlu1 %v318_v35, %s472_s1  ;;  %320 = vrot.lane.b32.xlu0 %v318_v35, %s473_s4 }
 0x14f   :  { %324 = vrot.lane.b32.xlu0 %v214_v37, %s473_s4 }
 0x1bd   :  { %v321_v38 = vpop.permute.xlu0 %320  ;;  %v328_v41 = vpop.permute.xlu1 %327 }
 0x1be   :  { %v331_v39 = vsel %vm330_vm2, %v214_v37, %v321_v38 }
 0x1c1   :  { %v325_v40 = vpop.permute.xlu0 %324 }
 0x1c2   :  { %v333_v3 = vsel %vm332_vm3, %v331_v39, %v325_v40 }
 0x1c3   :  { %v335_v42 = vsel %vm334_vm4, %v333_v3, %v328_v41 }
 0x1c4   :  { %336 = vst [vmem:[#allocation7] sm:$0xff] %v335_v42 }
 0x1c5   :  { %445 = shalt.err (!%p442_p6)
}
 0x1c6   :  { %s446_s10 = scalar_lea.hbm %s549_s2, 128 }
 0x1c7   :  { %p447_p7 = scmp.ne.s32.totalorder %s549_s2, %s446_s10  ;;  %p450_p8 = scmp.lt.u32.totalorder %s446_s10, %s549_s2 }
 0x1c9   :  { %p452_p9 = pnand %p450_p8, %p447_p7 }
 0x1cb   :  { %455 = shalt.err (!%p452_p9)
}
 0x1cc   :  { %346 = dma.vmem_to_hbm [thread:$0]  %s344_s6, 128, %s549_s2, [#allocation4]  }
 0x1cd   :  { %460 = dma.done.wait [#allocation4], 128  }
 0x1ce   :  { %461 = vsyncadd [#allocation4], 4294967168 }
 0x1cf   :  { %350 = vsyncpa [#allocation3], 1 }
 0x1d0   :  { %351 = vsyncpa [#allocation6], 1 }
 0x1d1   :  { %352 = vsyncpa [#allocation4], 1 }

</bundles_post_ra>
